<compile_context>
chip_gen: v5e
topology: v5e:2x2
jax: 0.10.0
libtpu: 0.0.40
codegen_flags: <defaults>
</compile_context>

<pallas_src>
import functools

import jax
import jax.numpy as jnp
from jax.experimental import pallas as pl
from jax.experimental.pallas import tpu as pltpu

LANE = 128
SUBLANE = 8


def _round_up(x, m):
    return ((x + m - 1) // m) * m


# ---------------------------------------------------------------------------
# Kernel
# ---------------------------------------------------------------------------
def qnetwork_kernel(x_ref, w1_ref, b1_ref, w2_ref, b2_ref, w3_ref, b3_ref, out_ref):
    # x:  (tb, S) f32
    # w1: (S, H1) bf16,    b1: (1, H1) f32
    # w2: (H1, H2) bf16,   b2: (1, H2) f32
    # w3: (H2, A_pad) bf16, b3: (1, A_pad) f32   (A padded to 128 lanes)
    x = x_ref[...]

    h1 = jnp.dot(x.astype(w1_ref.dtype), w1_ref[...],
                 preferred_element_type=jnp.float32) + b1_ref[...]
    h1 = jnp.maximum(h1, 0.0)

    h2 = jnp.dot(h1.astype(w2_ref.dtype), w2_ref[...],
                 preferred_element_type=jnp.float32) + b2_ref[...]
    h2 = jnp.maximum(h2, 0.0)

    q = jnp.dot(h2.astype(w3_ref.dtype), w3_ref[...],
                preferred_element_type=jnp.float32) + b3_ref[...]
    out_ref[...] = q.astype(out_ref.dtype)


# ---------------------------------------------------------------------------
# One-time parameter layout prep (hoisted out of the per-call path)
# ---------------------------------------------------------------------------
def prepare_params(params, weight_dtype=jnp.bfloat16):
    """Weights -> (in, out) bf16 (MXU-native on v5e/v6e/v7x), biases -> (1, out)
    f32, fc3 zero-padded to a lane-dense width (multiple of 128).
    Returns (prepared_tuple, action_size)."""
    w1_t = jnp.asarray(params["w1"]).T.astype(weight_dtype)
    w2_t = jnp.asarray(params["w2"]).T.astype(weight_dtype)
    w3_t = jnp.asarray(params["w3"]).T
    b1 = jnp.asarray(params["b1"]).reshape(1, -1).astype(jnp.float32)
    b2 = jnp.asarray(params["b2"]).reshape(1, -1).astype(jnp.float32)
    b3 = jnp.asarray(params["b3"]).reshape(1, -1).astype(jnp.float32)

    action_size = w3_t.shape[1]
    a_pad = _round_up(action_size, LANE)
    w3_p = (jnp.zeros((w3_t.shape[0], a_pad), weight_dtype)
            .at[:, :action_size].set(w3_t.astype(weight_dtype)))
    b3_p = jnp.zeros((1, a_pad), jnp.float32).at[:, :action_size].set(b3)
    return (w1_t, b1, w2_t, b2, w3_p, b3_p), action_size


def _dense_math(x, prepared):
    """Plain-XLA path with the same numerics as the kernel (bf16 MXU, f32 acc)."""
    w1, b1, w2, b2, w3p, b3p = prepared
    h1 = jnp.maximum(jnp.dot(x.astype(w1.dtype), w1,
                             preferred_element_type=jnp.float32) + b1, 0.0)
    h2 = jnp.maximum(jnp.dot(h1.astype(w2.dtype), w2,
                             preferred_element_type=jnp.float32) + b2, 0.0)
    return jnp.dot(h2.astype(w3p.dtype), w3p,
                   preferred_element_type=jnp.float32) + b3p


# ---------------------------------------------------------------------------
# Forward wrapper
# ---------------------------------------------------------------------------
@functools.partial(jax.jit,
                   static_argnames=("action_size", "block_b", "min_pallas_batch"))
def qnetwork_forward(state, prepared, *, action_size, block_b=2048,
                     min_pallas_batch=64):
    """state: (B, state_size) float32; prepared: output of prepare_params."""
    w1, b1, w2, b2, w3p, b3p = prepared
    B, S = state.shape
    H1 = w1.shape[1]
    H2 = w2.shape[1]
    A_pad = w3p.shape[1]

    # Small-batch fast path: at B ~ a few dozen the pallas_call dispatch costs
    # more than the math, and XLA fuses a 3-layer MLP of this size fine.
    if B <= min_pallas_batch:
        return _dense_math(state, prepared)[:, :action_size]

    # Batch tile: as large as block_b, but split into >= 2 grid steps when
    # possible so both v7x TensorCores get work (harmless on v5e/v6e).
    if B > 2 * SUBLANE:
        tb = min(block_b, _round_up(pl.cdiv(B, 2), SUBLANE))
    else:
        tb = _round_up(B, SUBLANE)
    tb = max(tb, SUBLANE)
    grid = (pl.cdiv(B, tb),)   # trailing partial block (if any) is masked by Pallas

    # Weights/biases: full-array BlockSpecs with constant index maps -> DMA'd
    # once, VMEM-resident across all grid steps (tiny: < 50 KB total).
    full2d = lambda a: pl.BlockSpec(a.shape, lambda i: (0, 0))

    flops = 2 * B * (S * H1 + H1 * H2 + H2 * A_pad)
    bytes_accessed = (4 * B * S                                   # x read (f32)
                      + 2 * (S * H1 + H1 * H2 + H2 * A_pad)       # weights (bf16)
                      + 4 * (H1 + H2 + A_pad)                     # biases (f32)
                      + 4 * B * A_pad)                            # out write (f32)

    out = pl.pallas_call(
        qnetwork_kernel,
        out_shape=jax.ShapeDtypeStruct((B, A_pad), jnp.float32),
        grid=grid,
        in_specs=[
            pl.BlockSpec((tb, S), lambda i: (i, 0)),
            full2d(w1), full2d(b1),
            full2d(w2), full2d(b2),
            full2d(w3p), full2d(b3p),
        ],
        out_specs=pl.BlockSpec((tb, A_pad), lambda i: (i, 0)),
        compiler_params=pltpu.CompilerParams(
            dimension_semantics=("parallel",),
            vmem_limit_bytes=32 * 1024 * 1024),
        cost_estimate=pl.CostEstimate(
            flops=flops, transcendentals=0, bytes_accessed=bytes_accessed),
    )(state, w1, b1, w2, b2, w3p, b3p)

    # Slice off the zero-padded action columns (inside jit). The padded
    # columns are never exposed to any consumer (no argmax-over-pad hazard).
    return out[:, :action_size]


# ---------------------------------------------------------------------------
# Parameter init matching PyTorch nn.Linear defaults
# ---------------------------------------------------------------------------
def init_qnetwork_params(key, state_size, action_size, fc1_units=64, fc2_units=64):
    """PyTorch nn.Linear default init: U(-1/sqrt(fan_in), 1/sqrt(fan_in))."""
    keys = jax.random.split(key, 6)

    def linear_init(kw, kb, fan_in, fan_out):
        bound = 1.0 / jnp.sqrt(jnp.float32(fan_in))
        w = jax.random.uniform(kw, (fan_out, fan_in), jnp.float32, -bound, bound)
        b = jax.random.uniform(kb, (fan_out,), jnp.float32, -bound, bound)
        return w, b

    w1, b1 = linear_init(keys[0], keys[1], state_size, fc1_units)
    w2, b2 = linear_init(keys[2], keys[3], fc1_units, fc2_units)
    w3, b3 = linear_init(keys[4], keys[5], fc2_units, action_size)
    return {"w1": w1, "b1": b1, "w2": w2, "b2": b2, "w3": w3, "b3": b3}


if __name__ == "__main__":
    state_size = 8
    action_size = 4

    key = jax.random.PRNGKey(0)
    pkey, xkey1, xkey2 = jax.random.split(key, 3)
    params = init_qnetwork_params(pkey, state_size, action_size,
                                  fc1_units=64, fc2_units=64)

    # One-time layout prep (transpose / bf16 cast / lane padding hoisted out).
    prepared, a = prepare_params(params)

    def reference(x):   # pure f32 reference, same math as the PyTorch forward
        h1 = jnp.maximum(x @ params["w1"].T + params["b1"], 0.0)
        h2 = jnp.maximum(h1 @ params["w2"].T + params["b2"], 0.0)
        return h2 @ params["w3"].T + params["b3"]

    # 1) Small batch, forcing the Pallas path so the kernel itself is exercised.
    state_small = jax.random.normal(xkey1, (8, state_size), dtype=jnp.float32)
    q_small = qnetwork_forward(state_small, prepared, action_size=a,
                               min_pallas_batch=0)
    jax.block_until_ready(q_small)
    assert q_small.shape == (8, action_size)
    assert jnp.allclose(q_small, reference(state_small), atol=3e-2, rtol=3e-2)

    # 2) Larger batch through the default path (Pallas, >= 2 grid steps).
    state_big = jax.random.normal(xkey2, (256, state_size), dtype=jnp.float32)
    q_big = qnetwork_forward(state_big, prepared, action_size=a)
    jax.block_until_ready(q_big)
    assert q_big.shape == (256, action_size)
    assert jnp.allclose(q_big, reference(state_big), atol=3e-2, rtol=3e-2)

    print("KERNEL_OK")
</pallas_src>

<mosaic_0001>
module attributes {stable_mosaic.version = 11 : i64} {
  func.func @qnetwork_kernel(%arg0: i32, %arg1: memref<8x8xf32, #tpu.memory_space<vmem>>, %arg2: memref<8x64xbf16, #tpu.memory_space<vmem>>, %arg3: memref<1x64xf32, #tpu.memory_space<vmem>>, %arg4: memref<64x64xbf16, #tpu.memory_space<vmem>>, %arg5: memref<1x64xf32, #tpu.memory_space<vmem>>, %arg6: memref<64x128xbf16, #tpu.memory_space<vmem>>, %arg7: memref<1x128xf32, #tpu.memory_space<vmem>>, %arg8: memref<8x128xf32, #tpu.memory_space<vmem>>) attributes {dimension_semantics = [#tpu.dimension_semantics<parallel>], iteration_bounds = array<i64: 1>, scalar_prefetch = 0 : i64, scratch_operands = 0 : i64, tpu.core_type = #tpu.core_type<tc>, window_params = [{transform_indices = @transform_0, window_bounds = array<i64: 8, 8>}, {pipeline_mode = #tpu.pipeline_mode<synchronous>, transform_indices = @transform_1, window_bounds = array<i64: 8, 64>}, {pipeline_mode = #tpu.pipeline_mode<synchronous>, transform_indices = @transform_2, window_bounds = array<i64: 1, 64>}, {pipeline_mode = #tpu.pipeline_mode<synchronous>, transform_indices = @transform_3, window_bounds = array<i64: 64, 64>}, {pipeline_mode = #tpu.pipeline_mode<synchronous>, transform_indices = @transform_4, window_bounds = array<i64: 1, 64>}, {pipeline_mode = #tpu.pipeline_mode<synchronous>, transform_indices = @transform_5, window_bounds = array<i64: 64, 128>}, {pipeline_mode = #tpu.pipeline_mode<synchronous>, transform_indices = @transform_6, window_bounds = array<i64: 1, 128>}, {transform_indices = @transform_7, window_bounds = array<i64: 8, 128>}]} {
    %c0 = arith.constant 0 : index
    %c0_0 = arith.constant 0 : index
    %0 = vector.load %arg1[%c0, %c0_0] : memref<8x8xf32, #tpu.memory_space<vmem>>, vector<8x8xf32>
    %1 = arith.truncf %0 : vector<8x8xf32> to vector<8x8xbf16>
    %c0_1 = arith.constant 0 : index
    %c0_2 = arith.constant 0 : index
    %2 = vector.load %arg2[%c0_1, %c0_2] : memref<8x64xbf16, #tpu.memory_space<vmem>>, vector<8x64xbf16>
    %cst = arith.constant dense<0.000000e+00> : vector<8x64xf32>
    %3 = tpu.matmul %1, %2, %cst {dimension_numbers = #tpu.dot_dimension_numbers<[1], [0], [0], [1], [0, 0, 1, 1], [], []>} : vector<8x8xbf16>, vector<8x64xbf16>, vector<8x64xf32> -> vector<8x64xf32>
    %c0_3 = arith.constant 0 : index
    %c0_4 = arith.constant 0 : index
    %4 = vector.load %arg3[%c0_3, %c0_4] : memref<1x64xf32, #tpu.memory_space<vmem>>, vector<1x64xf32>
    %5 = vector.broadcast %4 : vector<1x64xf32> to vector<8x64xf32>
    %6 = arith.addf %3, %5 : vector<8x64xf32>
    %cst_5 = arith.constant 0.000000e+00 : f32
    %7 = vector.broadcast %cst_5 : f32 to vector<8x64xf32>
    %8 = arith.maximumf %6, %7 : vector<8x64xf32>
    %9 = arith.truncf %8 : vector<8x64xf32> to vector<8x64xbf16>
    %c0_6 = arith.constant 0 : index
    %c0_7 = arith.constant 0 : index
    %10 = vector.load %arg4[%c0_6, %c0_7] : memref<64x64xbf16, #tpu.memory_space<vmem>>, vector<64x64xbf16>
    %cst_8 = arith.constant dense<0.000000e+00> : vector<8x64xf32>
    %11 = tpu.matmul %9, %10, %cst_8 {dimension_numbers = #tpu.dot_dimension_numbers<[1], [0], [0], [1], [0, 0, 1, 1], [], []>} : vector<8x64xbf16>, vector<64x64xbf16>, vector<8x64xf32> -> vector<8x64xf32>
    %c0_9 = arith.constant 0 : index
    %c0_10 = arith.constant 0 : index
    %12 = vector.load %arg5[%c0_9, %c0_10] : memref<1x64xf32, #tpu.memory_space<vmem>>, vector<1x64xf32>
    %13 = vector.broadcast %12 : vector<1x64xf32> to vector<8x64xf32>
    %14 = arith.addf %11, %13 : vector<8x64xf32>
    %cst_11 = arith.constant 0.000000e+00 : f32
    %15 = vector.broadcast %cst_11 : f32 to vector<8x64xf32>
    %16 = arith.maximumf %14, %15 : vector<8x64xf32>
    %17 = arith.truncf %16 : vector<8x64xf32> to vector<8x64xbf16>
    %c0_12 = arith.constant 0 : index
    %c0_13 = arith.constant 0 : index
    %18 = vector.load %arg6[%c0_12, %c0_13] : memref<64x128xbf16, #tpu.memory_space<vmem>>, vector<64x128xbf16>
    %cst_14 = arith.constant dense<0.000000e+00> : vector<8x128xf32>
    %19 = tpu.matmul %17, %18, %cst_14 {dimension_numbers = #tpu.dot_dimension_numbers<[1], [0], [0], [1], [0, 0, 1, 1], [], []>} : vector<8x64xbf16>, vector<64x128xbf16>, vector<8x128xf32> -> vector<8x128xf32>
    %c0_15 = arith.constant 0 : index
    %c0_16 = arith.constant 0 : index
    %20 = vector.load %arg7[%c0_15, %c0_16] : memref<1x128xf32, #tpu.memory_space<vmem>>, vector<1x128xf32>
    %21 = vector.broadcast %20 : vector<1x128xf32> to vector<8x128xf32>
    %22 = arith.addf %19, %21 : vector<8x128xf32>
    %c0_17 = arith.constant 0 : index
    %c0_18 = arith.constant 0 : index
    %23 = vector.load %arg8[%c0_17, %c0_18] : memref<8x128xf32, #tpu.memory_space<vmem>>, vector<8x128xf32>
    tpu.vector_store %arg8[%c0_17, %c0_18], %22 {strides = array<i32>} : memref<8x128xf32, #tpu.memory_space<vmem>>, vector<8x128xf32>,
    return
  }
  func.func @transform_0(%arg0: i32) -> (i32, i32) {
    %c0_i32 = arith.constant 0 : i32
    %c0_i32_0 = arith.constant 0 : i32
    return %arg0, %c0_i32 : i32, i32
  }
  func.func @transform_1(%arg0: i32) -> (i32, i32) {
    %c0_i32 = arith.constant 0 : i32
    %c0_i32_0 = arith.constant 0 : i32
    %c0_i32_1 = arith.constant 0 : i32
    return %c0_i32, %c0_i32_0 : i32, i32
  }
  func.func @transform_2(%arg0: i32) -> (i32, i32) {
    %c0_i32 = arith.constant 0 : i32
    %c0_i32_0 = arith.constant 0 : i32
    %c0_i32_1 = arith.constant 0 : i32
    return %c0_i32, %c0_i32_0 : i32, i32
  }
  func.func @transform_3(%arg0: i32) -> (i32, i32) {
    %c0_i32 = arith.constant 0 : i32
    %c0_i32_0 = arith.constant 0 : i32
    %c0_i32_1 = arith.constant 0 : i32
    return %c0_i32, %c0_i32_0 : i32, i32
  }
  func.func @transform_4(%arg0: i32) -> (i32, i32) {
    %c0_i32 = arith.constant 0 : i32
    %c0_i32_0 = arith.constant 0 : i32
    %c0_i32_1 = arith.constant 0 : i32
    return %c0_i32, %c0_i32_0 : i32, i32
  }
  func.func @transform_5(%arg0: i32) -> (i32, i32) {
    %c0_i32 = arith.constant 0 : i32
    %c0_i32_0 = arith.constant 0 : i32
    %c0_i32_1 = arith.constant 0 : i32
    return %c0_i32, %c0_i32_0 : i32, i32
  }
  func.func @transform_6(%arg0: i32) -> (i32, i32) {
    %c0_i32 = arith.constant 0 : i32
    %c0_i32_0 = arith.constant 0 : i32
    %c0_i32_1 = arith.constant 0 : i32
    return %c0_i32, %c0_i32_0 : i32, i32
  }
  func.func @transform_7(%arg0: i32) -> (i32, i32) {
    %c0_i32 = arith.constant 0 : i32
    %c0_i32_0 = arith.constant 0 : i32
    return %arg0, %c0_i32 : i32, i32
  }
}

</mosaic_0001>

<bundles_post_ra>
// kernel: qnetwork_forward.1
= control target key start
LH: loop header
LB: loop body
LE: loop exit
PB: predicated region body
PF: predicated region fallthrough
CT: control target
= control target key end

     0   :  { %12 = vsyncpa [#allocation3], 0  ;;  %s455_s0 = inlined_call_operand.hbm [shape: f32[8,8], index: 0, kind: input, shape index: {}]   ;;  %s456_s1 = inlined_call_operand.hbm [shape: bf16[8,64], index: 1, kind: input, shape index: {}]   ;;  %s457_s2 = inlined_call_operand.vmem [shape: f32[1,64], index: 2, kind: input, shape index: {}]   ;;  %s458_s3 = inlined_call_operand.hbm [shape: bf16[64,64], index: 3, kind: input, shape index: {}]   ;;  %s459_s4 = inlined_call_operand.vmem [shape: f32[1,64], index: 4, kind: input, shape index: {}]   ;;  %s460_s5 = inlined_call_operand.hbm [shape: bf16[64,128], index: 5, kind: input, shape index: {}]   ;;  %s461_s6 = inlined_call_operand.vmem [shape: f32[1,128], index: 6, kind: input, shape index: {}]   ;;  %s462_s7 = inlined_call_operand.vmem [shape: f32[8,128], index: 7, kind: output, shape index: {}]  }
   0x1   :  { %13 = vsyncpa [#allocation5], 0  ;;  %s31_s26 = sshll.u32 %s456_s1, 4  ;;  %s32_s26 = int_to_ptr.hbm [resolvable:$true] %s31_s26 }
   0x2   :  { %14 = vsyncpa [#allocation8], 0  ;;  %s385_s27 = smov [#allocation4]   ;;  %s20_s8 = sshll.u32 %s455_s0, 4  ;;  %s21_s8 = int_to_ptr.hbm [resolvable:$true] %s20_s8 }
   0x3   :  { %s33_s28 = sshll.u32 %s385_s27, 4  ;;  %s386_s9 = smov [#allocation2]   ;;  %s34_s28 = int_to_ptr.vmem [resolvable:$true] %s33_s28 }
   0x4   :  { %36 = dma.hbm_to_vmem [thread:$0]  %s32_s26, 64, %s34_s28, [#allocation5]  }
   0x5   :  { %s22_s10 = sshll.u32 %s386_s9, 4  ;;  %s43_s13 = sshll.u32 %s458_s3, 4  ;;  %s23_s10 = int_to_ptr.vmem [resolvable:$true] %s22_s10  ;;  %s44_s13 = int_to_ptr.hbm [resolvable:$true] %s43_s13 }
   0x6   :  { %25 = dma.hbm_to_vmem [thread:$0]  %s21_s8, 128, %s23_s10, [#allocation3]  }
   0x7   :  { %s387_s1 = smov [#allocation6]   ;;  %s58_s17 = sshll.u32 %s460_s5, 4  ;;  %s59_s17 = int_to_ptr.hbm [resolvable:$true] %s58_s17 }
   0x8   :  { %s45_s14 = sshll.u32 %s387_s1, 4  ;;  %s388_s18 = smov 64   ;;  %s46_s14 = int_to_ptr.vmem [resolvable:$true] %s45_s14 }
   0x9   :  { %s389_s0 = smov 4   ;;  %s390_s19 = smov [#allocation7]  }
   0xa   :  { %51 = dma.hbm_to_vmem [thread:$0]  %s44_s13, 512, %s46_s14, [#allocation5], %s388_s18, %s388_s18, %s389_s0  }
   0xb   :  { %s60_s20 = sshll.u32 %s390_s19, 4  ;;  %s61_s20 = int_to_ptr.vmem [resolvable:$true] %s60_s20 }
   0xc   :  { %66 = dma.hbm_to_vmem [thread:$0]  %s59_s17, 512, %s61_s20, [#allocation8], %s388_s18, %s388_s18, %s389_s0  }
   0xd   :  { %379 = dma.done.wait [#allocation3], 128  }
   0xe   :  { %380 = vsyncadd [#allocation3], 4294967168 }
   0xf   :  { %381 = dma.done.wait [#allocation5], 576  }
  0x10   :  { %382 = vsyncadd [#allocation5], 4294966720 }
  0x11   :  { %383 = dma.done.wait [#allocation8], 512  }
  0x12   :  { %384 = vsyncadd [#allocation8], 4294966784  ;;  %vm97_vm0 = vcmask 1043456   ;;  %v88_v0 = vld [vmem:[#allocation4] sm:$0xf]  ;;  %v86_v1 = vld [vmem:[#allocation2] sm:$0xff] }
  0x13   :  { %v269_v2 = vld [vmem:[#allocation6 + $0x18] sm:$0xff]  ;;  %v99_v3 = vsel %vm97_vm0, %v88_v0, 0  ;;  %v87_v4 = vpack.c.bf16 %v86_v1, %v86_v1  ;;  %vm93_vm1 = vcmask 64512   ;;  %v268_v5 = vld [vmem:[#allocation6 + $0x10] sm:$0xff]  ;;  %v267_v6 = vld [vmem:[#allocation6 + $0x8] sm:$0xff]  ;;  %vm152_vm2 = vcmask 523264  }
  0x14   :  { %108 = vmatpush.bf16.msra.mxu0 %v99_v3  ;;  %160 = vmatpush.bf16.msra.mxu1 %v269_v2  ;;  %v266_v7 = vld [vmem:[#allocation6] sm:$0xff]  ;;  %v273_v8 = vld [vmem:[#allocation7 + $0x18] sm:$0xff]  ;;  %v272_v9 = vld [vmem:[#allocation7 + $0x10] sm:$0xff] }
  0x15   :  { %214 = vmatpush.bf16.msra.mxu2 %v273_v8  ;;  %v280_v10 = vld [vmem:[%s457_s2] ss:$0 sm:$0xff]  ;;  %v271_v16 = vld [vmem:[#allocation7 + $0x8] sm:$0xff]  ;;  %v270_v17 = vld [vmem:[#allocation7] sm:$0xff] }
  0x16   :  { %v281_v18 = vld [vmem:[%s459_s4] ss:$0 sm:$0xff] }
  0x17   :  { %231 = vmatmul.msk.bf16.vlgmr.msra.gmra.mxu0 %vm93_vm1, %v87_v4  ;;  %v282_v24 = vld [vmem:[%s461_s6] ss:$0 sm:$0xff] }
  0x18   :  { %161 = vmatpush.bf16.msra.mxu1 %v268_v5 }
  0x19   :  { %215 = vmatpush.bf16.msra.mxu2 %v272_v9 }
  0x1c   :  { %162 = vmatpush.bf16.msra.mxu1 %v267_v6 }
  0x1d   :  { %216 = vmatpush.bf16.msra.mxu2 %v271_v16 }
  0x20   :  { %163 = vmatpush.bf16.msra.mxu1 %v266_v7 }
  0x21   :  { %217 = vmatpush.bf16.msra.mxu2 %v270_v17 }
  0x94   :  { %v110_v11 = vpop.f32.mrf.mxu0 }
  0x95   :  { %v111_v12 = vadd.f32 %v280_v10, %v110_v11 }
  0x97   :  { %v114_v13 = vmax.f32 %v111_v12, 0.0 }
  0x99   :  { %v115_v14 = vpack.c.bf16 %v114_v13, %v114_v13 }
  0x9b   :  { %248 = vmatmul.msk.bf16.vlgmr.msra.gmra.mxu1 %vm152_vm2, %v115_v14 }
  0x9c   :  { %v112_v15 = vpop.f32.mrf.mxu0 }
 0x118   :  { %v165_v19 = vpop.f32.mrf.mxu1 }
 0x119   :  { %v166_v20 = vadd.f32 %v281_v18, %v165_v19 }
 0x11b   :  { %v169_v21 = vmax.f32 %v166_v20, 0.0 }
 0x11d   :  { %v170_v22 = vpack.c.bf16 %v169_v21, %v169_v21 }
 0x11f   :  { %265 = vmatmul.msk.bf16.vlgmr.msra.gmra.mxu2 %vm152_vm2, %v170_v22 }
 0x120   :  { %v167_v23 = vpop.f32.mrf.mxu1 }
 0x1a2   :  { %v219_v25 = vpop.f32.mrf.mxu2 }
 0x1a3   :  { %v220_v26 = vadd.f32 %v282_v24, %v219_v25 }
 0x1a5   :  { %223 = vst [vmem:[%s462_s7] sm:$0xff] %v220_v26 }
 0x1aa   :  { %v221_v27 = vpop.f32.mrf.mxu2 }
 0x1ab   :  { %228 = vsyncpa [#allocation3], 1 }
 0x1ac   :  { %229 = vsyncpa [#allocation5], 1 }
 0x1ad   :  { %230 = vsyncpa [#allocation8], 1 }

</bundles_post_ra>
